<compile_context>
chip_gen: v7x
topology: tpu7x:2x2x1
jax: 0.10.0
libtpu: 0.0.40
codegen_flags: <defaults>
</compile_context>

<pallas_src>
import jax
import jax.numpy as jnp
from jax.experimental import pallas as pl
from jax.experimental.pallas import tpu as pltpu

LANE = 128  # pad every feature dim (120 / 84 / 10) up to one lane-width


def _round_up(x, m):
    return (x + m - 1) // m * m


def boringnet_kernel(x_ref, w1_ref, b1_ref, w2_ref, b2_ref, w3_ref, b3_ref,
                     o_ref):
    # fc1 + relu: cast the f32 activation tile to bf16 in-kernel (no extra HBM
    # pass), bf16 x bf16 -> f32 accumulation on the MXU.
    x = x_ref[...].astype(jnp.bfloat16)
    h1 = jnp.dot(x, w1_ref[...], preferred_element_type=jnp.float32)
    h1 = jnp.maximum(h1 + b1_ref[...], 0.0)
    # fc2 + relu (bf16 inputs, f32 accumulation)
    h2 = jnp.dot(h1.astype(jnp.bfloat16), w2_ref[...],
                 preferred_element_type=jnp.float32)
    h2 = jnp.maximum(h2 + b2_ref[...], 0.0)
    # fc3 + relu (lane-dense 128-wide padded output; padded cols are exactly 0)
    h3 = jnp.dot(h2.astype(jnp.bfloat16), w3_ref[...],
                 preferred_element_type=jnp.float32)
    o_ref[...] = jnp.maximum(h3 + b3_ref[...], 0.0).astype(o_ref.dtype)


def _choose_tm(batch, max_tm=512):
    """Static tile choice on the batch (M) axis."""
    # Tiny batches: don't feed the MXU padded rows or DMA padded tiles.
    tm = min(max_tm, _round_up(batch, 8))
    # Mid/large batches: keep >= 2 grid steps so dimension_semantics=
    # ("parallel",) can shard across both TensorCores on v7x.
    if batch >= 64:
        tm = min(tm, max(8, _round_up(pl.cdiv(batch, 2), 8)))
    return tm


def boringnet_forward(x_nchw, kparams, *, n_out=10, max_tm=512):
    """x_nchw: (B, 3, 32, 32) float32, kparams: padded/casted params.
    Returns (B, 10) float32."""
    w1, b1, w2, b2, w3, b3 = kparams
    B = x_nchw.shape[0]
    # Flatten exactly like torch's x.view(-1, 32*32*3) on NCHW input.
    # Stays f32: the bf16 cast happens per-tile inside the kernel.
    x = x_nchw.reshape(B, -1)
    K = x.shape[1]          # 3072
    n_pad = w3.shape[1]     # 128

    tm = _choose_tm(B, max_tm)
    grid = (pl.cdiv(B, tm),)

    param_bytes = sum(int(p.size) * p.dtype.itemsize for p in kparams)
    flops = 2 * B * (K * 120 + 120 * 84 + 84 * 10)
    bytes_accessed = int(x.size * x.dtype.itemsize + param_bytes
                         + B * n_pad * 4)

    # Explicit VMEM budget: double-buffered f32 x tile + f32 out tile,
    # (default) double-buffered weights, plus headroom for intermediates.
    vmem_bytes = (2 * tm * K * 4 + 2 * tm * n_pad * 4 + 2 * param_bytes
                  + (8 << 20))
    vmem_limit = int(min(max(vmem_bytes, 16 << 20), 48 << 20))

    weight_specs = [
        pl.BlockSpec(p.shape, lambda i: (0, 0))   # constant index -> 1 fetch
        for p in (w1, b1, w2, b2, w3, b3)
    ]

    out = pl.pallas_call(
        boringnet_kernel,
        out_shape=jax.ShapeDtypeStruct((B, n_pad), jnp.float32),
        grid=grid,
        in_specs=[
            # x: one (tm, 3072) f32 tile per grid step (pipelined vs compute).
            pl.BlockSpec((tm, K), lambda i: (i, 0)),
            *weight_specs,
        ],
        out_specs=pl.BlockSpec((tm, n_pad), lambda i: (i, 0)),
        compiler_params=pltpu.CompilerParams(
            dimension_semantics=("parallel",),
            vmem_limit_bytes=vmem_limit),
        cost_estimate=pl.CostEstimate(
            flops=flops, transcendentals=0, bytes_accessed=bytes_accessed),
    )(x, w1, b1, w2, b2, w3, b3)
    # Padded cols 10..127 are exactly zero; slice back to the real width.
    return out[:, :n_out]


def init_params(key):
    """Deterministic init; shapes mirror nn.Linear(3072,120), (120,84), (84,10).
    Weights are kept as (in, out) = W^T so the kernel computes x @ W + b."""
    ks = jax.random.split(key, 6)

    def linear(kw, kb, fan_in, fan_out):
        bound = 1.0 / jnp.sqrt(fan_in)
        w = jax.random.uniform(kw, (fan_in, fan_out), jnp.float32, -bound, bound)
        b = jax.random.uniform(kb, (fan_out,), jnp.float32, -bound, bound)
        return w, b

    w1, b1 = linear(ks[0], ks[1], 32 * 32 * 3, 120)
    w2, b2 = linear(ks[2], ks[3], 120, 84)
    w3, b3 = linear(ks[4], ks[5], 84, 10)
    return (w1, b1, w2, b2, w3, b3)


def _pad_to(a, shape):
    return jnp.pad(a, [(0, t - s) for s, t in zip(a.shape, shape)])


def prepare_params(params, lane=LANE):
    """Zero-pad all feature dims to 128 (lane-dense) and cast weights to bf16.
    Zero padding is exact: padded h columns are relu(0)=0 and padded weight
    rows are 0, so the first 10 output columns are unchanged."""
    w1, b1, w2, b2, w3, b3 = params
    w1p = _pad_to(w1, (w1.shape[0], lane)).astype(jnp.bfloat16)
    b1p = _pad_to(b1.reshape(1, -1), (1, lane))
    w2p = _pad_to(w2, (lane, lane)).astype(jnp.bfloat16)
    b2p = _pad_to(b2.reshape(1, -1), (1, lane))
    w3p = _pad_to(w3, (lane, lane)).astype(jnp.bfloat16)
    b3p = _pad_to(b3.reshape(1, -1), (1, lane))
    return (w1p, b1p, w2p, b2p, w3p, b3p)


def reference_forward(x_nchw, params):
    """Plain-JAX reference using the same mixed precision as the kernel
    (bf16 matmul inputs, f32 accumulation, f32 bias/relu)."""
    w1, b1, w2, b2, w3, b3 = params
    x = x_nchw.reshape(x_nchw.shape[0], -1)
    h = jnp.dot(x.astype(jnp.bfloat16), w1.astype(jnp.bfloat16),
                preferred_element_type=jnp.float32)
    h = jnp.maximum(h + b1, 0.0)
    h = jnp.dot(h.astype(jnp.bfloat16), w2.astype(jnp.bfloat16),
                preferred_element_type=jnp.float32)
    h = jnp.maximum(h + b2, 0.0)
    h = jnp.dot(h.astype(jnp.bfloat16), w3.astype(jnp.bfloat16),
                preferred_element_type=jnp.float32)
    return jnp.maximum(h + b3, 0.0)


if __name__ == "__main__":
    key = jax.random.PRNGKey(0)
    k_x, k_x2, k_p = jax.random.split(key, 3)

    params = init_params(k_p)
    kparams = prepare_params(params)
    fwd = jax.jit(boringnet_forward)

    # Small test: batch=2, NCHW (2, 3, 32, 32) as implied by fc1=Linear(3072,.).
    x = jax.random.normal(k_x, (2, 3, 32, 32), jnp.float32)
    out = jax.block_until_ready(fwd(x, kparams))
    ref = reference_forward(x, params)
    assert out.shape == (2, 10)
    assert jnp.allclose(out, ref, atol=2e-3, rtol=2e-3), float(
        jnp.max(jnp.abs(out - ref)))

    # Second check exercising the multi-step (grid > 1) pipelined path.
    x2 = jax.random.normal(k_x2, (160, 3, 32, 32), jnp.float32)
    out2 = jax.block_until_ready(fwd(x2, kparams))
    ref2 = reference_forward(x2, params)
    assert out2.shape == (160, 10)
    assert jnp.allclose(out2, ref2, atol=2e-3, rtol=2e-3), float(
        jnp.max(jnp.abs(out2 - ref2)))

    print("KERNEL_OK")
</pallas_src>

<mosaic_0001>
module attributes {stable_mosaic.version = 11 : i64} {
  func.func @boringnet_kernel(%arg0: i32, %arg1: memref<8x3072xf32, #tpu.memory_space<vmem>>, %arg2: memref<3072x128xbf16, #tpu.memory_space<vmem>>, %arg3: memref<1x128xf32, #tpu.memory_space<vmem>>, %arg4: memref<128x128xbf16, #tpu.memory_space<vmem>>, %arg5: memref<1x128xf32, #tpu.memory_space<vmem>>, %arg6: memref<128x128xbf16, #tpu.memory_space<vmem>>, %arg7: memref<1x128xf32, #tpu.memory_space<vmem>>, %arg8: memref<8x128xf32, #tpu.memory_space<vmem>>) attributes {dimension_semantics = [#tpu.dimension_semantics<parallel>], iteration_bounds = array<i64: 1>, scalar_prefetch = 0 : i64, scratch_operands = 0 : i64, tpu.core_type = #tpu.core_type<tc>, window_params = [{transform_indices = @transform_0, window_bounds = array<i64: 8, 3072>}, {pipeline_mode = #tpu.pipeline_mode<synchronous>, transform_indices = @transform_1, window_bounds = array<i64: 3072, 128>}, {pipeline_mode = #tpu.pipeline_mode<synchronous>, transform_indices = @transform_2, window_bounds = array<i64: 1, 128>}, {pipeline_mode = #tpu.pipeline_mode<synchronous>, transform_indices = @transform_3, window_bounds = array<i64: 128, 128>}, {pipeline_mode = #tpu.pipeline_mode<synchronous>, transform_indices = @transform_4, window_bounds = array<i64: 1, 128>}, {pipeline_mode = #tpu.pipeline_mode<synchronous>, transform_indices = @transform_5, window_bounds = array<i64: 128, 128>}, {pipeline_mode = #tpu.pipeline_mode<synchronous>, transform_indices = @transform_6, window_bounds = array<i64: 1, 128>}, {transform_indices = @transform_7, window_bounds = array<i64: 8, 128>}]} {
    %c0 = arith.constant 0 : index
    %c0_0 = arith.constant 0 : index
    %0 = vector.load %arg1[%c0, %c0_0] : memref<8x3072xf32, #tpu.memory_space<vmem>>, vector<8x3072xf32>
    %1 = arith.truncf %0 : vector<8x3072xf32> to vector<8x3072xbf16>
    %c0_1 = arith.constant 0 : index
    %c0_2 = arith.constant 0 : index
    %2 = vector.load %arg2[%c0_1, %c0_2] : memref<3072x128xbf16, #tpu.memory_space<vmem>>, vector<3072x128xbf16>
    %cst = arith.constant dense<0.000000e+00> : vector<8x128xf32>
    %3 = tpu.matmul %1, %2, %cst {dimension_numbers = #tpu.dot_dimension_numbers<[1], [0], [0], [1], [0, 0, 1, 1], [], []>} : vector<8x3072xbf16>, vector<3072x128xbf16>, vector<8x128xf32> -> vector<8x128xf32>
    %c0_3 = arith.constant 0 : index
    %c0_4 = arith.constant 0 : index
    %4 = vector.load %arg3[%c0_3, %c0_4] : memref<1x128xf32, #tpu.memory_space<vmem>>, vector<1x128xf32>
    %5 = vector.broadcast %4 : vector<1x128xf32> to vector<8x128xf32>
    %6 = arith.addf %3, %5 : vector<8x128xf32>
    %cst_5 = arith.constant 0.000000e+00 : f32
    %7 = vector.broadcast %cst_5 : f32 to vector<8x128xf32>
    %8 = arith.maximumf %6, %7 : vector<8x128xf32>
    %9 = arith.truncf %8 : vector<8x128xf32> to vector<8x128xbf16>
    %c0_6 = arith.constant 0 : index
    %c0_7 = arith.constant 0 : index
    %10 = vector.load %arg4[%c0_6, %c0_7] : memref<128x128xbf16, #tpu.memory_space<vmem>>, vector<128x128xbf16>
    %cst_8 = arith.constant dense<0.000000e+00> : vector<8x128xf32>
    %11 = tpu.matmul %9, %10, %cst_8 {dimension_numbers = #tpu.dot_dimension_numbers<[1], [0], [0], [1], [0, 0, 1, 1], [], []>} : vector<8x128xbf16>, vector<128x128xbf16>, vector<8x128xf32> -> vector<8x128xf32>
    %c0_9 = arith.constant 0 : index
    %c0_10 = arith.constant 0 : index
    %12 = vector.load %arg5[%c0_9, %c0_10] : memref<1x128xf32, #tpu.memory_space<vmem>>, vector<1x128xf32>
    %13 = vector.broadcast %12 : vector<1x128xf32> to vector<8x128xf32>
    %14 = arith.addf %11, %13 : vector<8x128xf32>
    %cst_11 = arith.constant 0.000000e+00 : f32
    %15 = vector.broadcast %cst_11 : f32 to vector<8x128xf32>
    %16 = arith.maximumf %14, %15 : vector<8x128xf32>
    %17 = arith.truncf %16 : vector<8x128xf32> to vector<8x128xbf16>
    %c0_12 = arith.constant 0 : index
    %c0_13 = arith.constant 0 : index
    %18 = vector.load %arg6[%c0_12, %c0_13] : memref<128x128xbf16, #tpu.memory_space<vmem>>, vector<128x128xbf16>
    %cst_14 = arith.constant dense<0.000000e+00> : vector<8x128xf32>
    %19 = tpu.matmul %17, %18, %cst_14 {dimension_numbers = #tpu.dot_dimension_numbers<[1], [0], [0], [1], [0, 0, 1, 1], [], []>} : vector<8x128xbf16>, vector<128x128xbf16>, vector<8x128xf32> -> vector<8x128xf32>
    %c0_15 = arith.constant 0 : index
    %c0_16 = arith.constant 0 : index
    %20 = vector.load %arg7[%c0_15, %c0_16] : memref<1x128xf32, #tpu.memory_space<vmem>>, vector<1x128xf32>
    %21 = vector.broadcast %20 : vector<1x128xf32> to vector<8x128xf32>
    %22 = arith.addf %19, %21 : vector<8x128xf32>
    %cst_17 = arith.constant 0.000000e+00 : f32
    %23 = vector.broadcast %cst_17 : f32 to vector<8x128xf32>
    %24 = arith.maximumf %22, %23 : vector<8x128xf32>
    %c0_18 = arith.constant 0 : index
    %c0_19 = arith.constant 0 : index
    %25 = vector.load %arg8[%c0_18, %c0_19] : memref<8x128xf32, #tpu.memory_space<vmem>>, vector<8x128xf32>
    tpu.vector_store %arg8[%c0_18, %c0_19], %24 {strides = array<i32>} : memref<8x128xf32, #tpu.memory_space<vmem>>, vector<8x128xf32>,
    return
  }
  func.func @transform_0(%arg0: i32) -> (i32, i32) {
    %c0_i32 = arith.constant 0 : i32
    %c0_i32_0 = arith.constant 0 : i32
    return %arg0, %c0_i32 : i32, i32
  }
  func.func @transform_1(%arg0: i32) -> (i32, i32) {
    %c0_i32 = arith.constant 0 : i32
    %c0_i32_0 = arith.constant 0 : i32
    %c0_i32_1 = arith.constant 0 : i32
    return %c0_i32, %c0_i32_0 : i32, i32
  }
  func.func @transform_2(%arg0: i32) -> (i32, i32) {
    %c0_i32 = arith.constant 0 : i32
    %c0_i32_0 = arith.constant 0 : i32
    %c0_i32_1 = arith.constant 0 : i32
    return %c0_i32, %c0_i32_0 : i32, i32
  }
  func.func @transform_3(%arg0: i32) -> (i32, i32) {
    %c0_i32 = arith.constant 0 : i32
    %c0_i32_0 = arith.constant 0 : i32
    %c0_i32_1 = arith.constant 0 : i32
    return %c0_i32, %c0_i32_0 : i32, i32
  }
  func.func @transform_4(%arg0: i32) -> (i32, i32) {
    %c0_i32 = arith.constant 0 : i32
    %c0_i32_0 = arith.constant 0 : i32
    %c0_i32_1 = arith.constant 0 : i32
    return %c0_i32, %c0_i32_0 : i32, i32
  }
  func.func @transform_5(%arg0: i32) -> (i32, i32) {
    %c0_i32 = arith.constant 0 : i32
    %c0_i32_0 = arith.constant 0 : i32
    %c0_i32_1 = arith.constant 0 : i32
    return %c0_i32, %c0_i32_0 : i32, i32
  }
  func.func @transform_6(%arg0: i32) -> (i32, i32) {
    %c0_i32 = arith.constant 0 : i32
    %c0_i32_0 = arith.constant 0 : i32
    %c0_i32_1 = arith.constant 0 : i32
    return %c0_i32, %c0_i32_0 : i32, i32
  }
  func.func @transform_7(%arg0: i32) -> (i32, i32) {
    %c0_i32 = arith.constant 0 : i32
    %c0_i32_0 = arith.constant 0 : i32
    return %arg0, %c0_i32 : i32, i32
  }
}

</mosaic_0001>

<bundles_post_ra>
// kernel: boringnet_forward.1
= control target key start
LH: loop header
LB: loop body
LE: loop exit
PB: predicated region body
PF: predicated region fallthrough
CT: control target
= control target key end

     0   :  { %12 = vsyncpa [#allocation3], 0  ;;  %s3702_s0 = inlined_call_operand.vmem [shape: f32[2,3072], index: 0, kind: input, shape index: {}]   ;;  %s3703_s1 = inlined_call_operand.hbm [shape: bf16[3072,128], index: 1, kind: input, shape index: {}]   ;;  %s3704_s2 = inlined_call_operand.vmem [shape: f32[1,128], index: 2, kind: input, shape index: {}]   ;;  %s3705_s3 = inlined_call_operand.vmem [shape: bf16[128,128], index: 3, kind: input, shape index: {}]   ;;  %s3706_s4 = inlined_call_operand.vmem [shape: f32[1,128], index: 4, kind: input, shape index: {}]   ;;  %s3707_s5 = inlined_call_operand.vmem [shape: bf16[128,128], index: 5, kind: input, shape index: {}]   ;;  %s3708_s6 = inlined_call_operand.vmem [shape: f32[1,128], index: 6, kind: input, shape index: {}]   ;;  %s3709_s7 = inlined_call_operand.hbm [shape: f32[2,128], index: 7, kind: output, shape index: {}]  }
   0x1   :  { %13 = vsyncpa [#allocation4], 0  ;;  %s3456_s24 = smov [#allocation2]   ;;  %s3408_s28 = scalar_lea.hbm %s3703_s1, 24576 }
   0x2   :  { %s21_s25 = sshll.u32 %s3456_s24, 4  ;;  %p3409_p0 = scmp.ne.s32.totalorder %s3703_s1, %s3408_s28  ;;  %s22_s25 = int_to_ptr.vmem [resolvable:$true] %s21_s25 }
   0x3   :  { %p3412_p1 = scmp.lt.u32.totalorder %s3408_s28, %s3703_s1 }
   0x5   :  { %p3414_p2 = pnand %p3412_p1, %p3409_p0 }
   0x7   :  { %3417 = shalt.err (!%p3414_p2)
}
   0x8   :  { %s3418_s10 = scalar_lea.vmem %s22_s25, 24576  ;;  %p3423_p4 = scmp.lt.s32.totalorder %s22_s25, %s22_s25 }
   0x9   :  { %p3419_p3 = scmp.ne.s32.totalorder %s22_s25, %s3418_s10  ;;  %p3424_p5 = scmp.lt.s32.totalorder %s3418_s10, %s3418_s10 }
   0xb   :  { %p3425_p6 = por %p3424_p5, %p3423_p4 }
   0xd   :  { %p3426_p7 = pnand %p3425_p6, %p3419_p3 }
   0xf   :  { %3429 = shalt.err (!%p3426_p7)
}
  0x10   :  { %s3457_s11 = smov 64   ;;  %s3458_s12 = smov 4  }
  0x11   :  { %27 = dma.hbm_to_vmem [thread:$0]  %s3703_s1, 24576, %s22_s25, [#allocation3], %s3457_s11, %s3457_s11, %s3458_s12  }
  0x12   :  { %3452 = dma.done.wait [#allocation3], 24576  }
  0x13   :  { %3453 = vsyncadd [#allocation3], 4294942720  ;;  %v3164_v0 = vld [vmem:[#allocation2 + $0x40] sm:$0xff]   ;;  %v3168_v4 = vld [vmem:[#allocation2 + $0x48] sm:$0xff]   ;;  %v3459_v24 = vmov 1983009808   ;;  %v97_v26 = vlaneseq }
  0x14   :  { %v3165_v1 = vld [vmem:[#allocation2 + $0xc0] sm:$0xff]   ;;  %2833 = vmatprep.subr.bf16.mxu0 %v3164_v0  ;;  %v3169_v5 = vld [vmem:[#allocation2 + $0xc8] sm:$0xff]   ;;  %v3172_v8 = vld [vmem:[#allocation2 + $0x50] sm:$0xff]   ;;  %v95_v25 = vunpack.c.l.s4 %v3459_v24  ;;  %vm3461_vm0 = vmmov 0  }
  0x15   :  { %v3166_v2 = vld [vmem:[#allocation2] sm:$0xff]   ;;  %2855 = vmatprep.subr.bf16.mxu1 %v3165_v1  ;;  %v3170_v6 = vld [vmem:[#allocation2 + $0x8] sm:$0xff]   ;;  %v3173_v9 = vld [vmem:[#allocation2 + $0xd0] sm:$0xff]   ;;  %v98_v32 = vshrl.u32 %v97_v26, 7 }
  0x16   :  { %v3167_v3 = vld [vmem:[#allocation2 + $0x80] sm:$0xff]   ;;  %2834 = vmatpush3.bf16.msra.mxu0 %v3166_v2  ;;  %v3171_v7 = vld [vmem:[#allocation2 + $0x88] sm:$0xff]   ;;  %v3174_v10 = vld [vmem:[#allocation2 + $0x10] sm:$0xff]   ;;  %v96_v31 = vunpack.c.0.s8 %v95_v25 }
  0x17   :  { %2856 = vmatpush3.bf16.msra.mxu1 %v3167_v3  ;;  %2835 = vmatprep.subr.bf16.mxu0 %v3168_v4  ;;  %v3175_v11 = vld [vmem:[#allocation2 + $0x90] sm:$0xff]   ;;  %v3176_v12 = vld [vmem:[#allocation2 + $0x58] sm:$0xff]   ;;  %v3180_v16 = vld [vmem:[#allocation2 + $0x60] sm:$0xff]  }
  0x18   :  { %2857 = vmatprep.subr.bf16.mxu1 %v3169_v5  ;;  %v3177_v13 = vld [vmem:[#allocation2 + $0xd8] sm:$0xff]   ;;  %v3181_v17 = vld [vmem:[#allocation2 + $0xe0] sm:$0xff]   ;;  %v3184_v20 = vld [vmem:[#allocation2 + $0x68] sm:$0xff]   ;;  %v3517_v37 = vsub.s32 %v96_v31, %v98_v32 }
  0x19   :  { %v3178_v14 = vld [vmem:[#allocation2 + $0x18] sm:$0xff]   ;;  %v3182_v18 = vld [vmem:[#allocation2 + $0x20] sm:$0xff]   ;;  %v3185_v21 = vld [vmem:[#allocation2 + $0xe8] sm:$0xff]  }
  0x1a   :  { %2836 = vmatpush3.bf16.msra.mxu0 %v3170_v6  ;;  %v3179_v15 = vld [vmem:[#allocation2 + $0x98] sm:$0xff]   ;;  %v3183_v19 = vld [vmem:[#allocation2 + $0xa0] sm:$0xff]   ;;  %v3186_v22 = vld [vmem:[#allocation2 + $0x28] sm:$0xff]  }
  0x1b   :  { %2858 = vmatpush3.bf16.msra.mxu1 %v3171_v7  ;;  %2837 = vmatprep.subr.bf16.mxu0 %v3172_v8  ;;  %v3187_v23 = vld [vmem:[#allocation2 + $0xa8] sm:$0xff]   ;;  %v3188_v27 = vld [vmem:[#allocation2 + $0x70] sm:$0xff]   ;;  %v3192_v33 = vld [vmem:[#allocation2 + $0x78] sm:$0xff]  }
  0x1c   :  { %2859 = vmatprep.subr.bf16.mxu1 %v3173_v9  ;;  %v3189_v28 = vld [vmem:[#allocation2 + $0xf0] sm:$0xff]   ;;  %v3193_v34 = vld [vmem:[#allocation2 + $0xf8] sm:$0xff]   ;;  %v3202_v44 = vld [vmem:[#allocation2 + $0x140] sm:$0xff]  }
  0x1d   :  { %v3190_v29 = vld [vmem:[#allocation2 + $0x30] sm:$0xff]   ;;  %v3194_v35 = vld [vmem:[#allocation2 + $0x38] sm:$0xff]   ;;  %v3203_v47 = vld [vmem:[#allocation2 + $0x1c0] sm:$0xff]  }
  0x1e   :  { %2838 = vmatpush3.bf16.msra.mxu0 %v3174_v10  ;;  %v3191_v30 = vld [vmem:[#allocation2 + $0xb0] sm:$0xff]   ;;  %v3195_v36 = vld [vmem:[#allocation2 + $0xb8] sm:$0xff]   ;;  %v3204_v50 = vld [vmem:[#allocation2 + $0x100] sm:$0xff]  }
  0x1f   :  { %2860 = vmatpush3.bf16.msra.mxu1 %v3175_v11  ;;  %2839 = vmatprep.subr.bf16.mxu0 %v3176_v12  ;;  %v3196_v38 = vld [vmem:[%s3702_s0] ss:$48 sps:$4 sm:$0xff]   ;;  %v3200_v40 = vld [vmem:[%s3702_s0 + $0x4] ss:$48 sps:$4 sm:$0xff]   ;;  %v3206_v56 = vld [vmem:[#allocation2 + $0x148] sm:$0xff]  }
  0x20   :  { %2861 = vmatprep.subr.bf16.mxu1 %v3177_v13  ;;  %v3198_v39 = vld [vmem:[%s3702_s0 + $0x60] ss:$48 sps:$4 sm:$0xff]   ;;  %v3201_v41 = vld [vmem:[%s3702_s0 + $0x64] ss:$48 sps:$4 sm:$0xff]   ;;  %v100_v42 = vrot.slane %v3196_v38, %v3517_v37  ;;  %v107_v45 = vrot.slane %v3200_v40, %v3517_v37  ;;  %v3207_v59 = vld [vmem:[#allocation2 + $0x1c8] sm:$0xff]  }
  0x21   :  { %v114_v43 = vrot.slane %v3198_v39, %v3517_v37  ;;  %v121_v46 = vrot.slane %v3201_v41, %v3517_v37  ;;  %v3205_v53 = vld [vmem:[#allocation2 + $0x180] sm:$0xff]   ;;  %v3208_v60 = vld [vmem:[#allocation2 + $0x108] sm:$0xff]   ;;  %v3210_v62 = vld [vmem:[#allocation2 + $0x150] sm:$0xff]  }
  0x22   :  { %2840 = vmatpush3.bf16.msra.mxu0 %v3178_v14  ;;  %v3209_v61 = vld [vmem:[#allocation2 + $0x188] sm:$0xff]   ;;  %v3211_v63 = vld [vmem:[#allocation2 + $0x1d0] sm:$0xff]   ;;  %v3214_v2 = vld [vmem:[#allocation2 + $0x158] sm:$0xff]  }
  0x23   :  { %2862 = vmatpush3.bf16.msra.mxu1 %v3179_v15  ;;  %2841 = vmatprep.subr.bf16.mxu0 %v3180_v16  ;;  %v123_v48 = vcombine.high %v100_v42, %v114_v43  ;;  %v122_v49 = vcombine.low %v100_v42, %v114_v43  ;;  %v125_v51 = vcombine.high %v107_v45, %v121_v46  ;;  %v3212_v0 = vld [vmem:[#allocation2 + $0x110] sm:$0xff]   ;;  %v3215_v3 = vld [vmem:[#allocation2 + $0x1d8] sm:$0xff]   ;;  %v3218_v6 = vld [vmem:[#allocation2 + $0x160] sm:$0xff]  }
  0x24   :  { %2863 = vmatprep.subr.bf16.mxu1 %v3181_v17  ;;  %v124_v52 = vcombine.low %v107_v45, %v121_v46  ;;  %v3213_v1 = vld [vmem:[#allocation2 + $0x190] sm:$0xff]   ;;  %v3216_v4 = vld [vmem:[#allocation2 + $0x118] sm:$0xff]   ;;  %v3219_v7 = vld [vmem:[#allocation2 + $0x1e0] sm:$0xff]  }
  0x25   :  { %v331_v54 = vpack.c.bf16 %v123_v48, %v123_v48  ;;  %v330_v55 = vpack.c.bf16 %v122_v49, %v122_v49  ;;  %v333_v57 = vpack.c.bf16 %v125_v51, %v125_v51  ;;  %v3217_v5 = vld [vmem:[#allocation2 + $0x198] sm:$0xff]   ;;  %v3220_v8 = vld [vmem:[#allocation2 + $0x120] sm:$0xff]   ;;  %v3222_v10 = vld [vmem:[#allocation2 + $0x168] sm:$0xff]  }
  0x26   :  { %2842 = vmatpush3.bf16.msra.mxu0 %v3182_v18  ;;  %v332_v58 = vpack.c.bf16 %v124_v52, %v124_v52  ;;  %v3221_v9 = vld [vmem:[#allocation2 + $0x1a0] sm:$0xff]   ;;  %v3223_v11 = vld [vmem:[#allocation2 + $0x1e8] sm:$0xff]   ;;  %v3226_v14 = vld [vmem:[#allocation2 + $0x170] sm:$0xff]  }
  0x27   :  { %2864 = vmatpush3.bf16.msra.mxu1 %v3183_v19  ;;  %2843 = vmatprep.subr.bf16.mxu0 %v3184_v20  ;;  %v3224_v12 = vld [vmem:[#allocation2 + $0x128] sm:$0xff]   ;;  %v3227_v15 = vld [vmem:[#allocation2 + $0x1f0] sm:$0xff]   ;;  %v3230_v18 = vld [vmem:[#allocation2 + $0x178] sm:$0xff]  }
  0x28   :  { %2865 = vmatprep.subr.bf16.mxu1 %v3185_v21  ;;  %1929 = vmatprep.mubr.bf16.mxu0 %v331_v54  ;;  %v3225_v13 = vld [vmem:[#allocation2 + $0x1a8] sm:$0xff]   ;;  %v3228_v16 = vld [vmem:[#allocation2 + $0x130] sm:$0xff]   ;;  %v3231_v19 = vld [vmem:[#allocation2 + $0x1f8] sm:$0xff]  }
  0x29   :  { %1969 = vmatprep.mubr.bf16.mxu1 %v333_v57  ;;  %v3229_v17 = vld [vmem:[#allocation2 + $0x1b0] sm:$0xff]   ;;  %v3232_v20 = vld [vmem:[#allocation2 + $0x138] sm:$0xff]   ;;  %v3241_v31 = vld [vmem:[#allocation2 + $0x2c0] sm:$0xff]  }
  0x2a   :  { %2844 = vmatpush3.bf16.msra.mxu0 %v3186_v22  ;;  %v3233_v21 = vld [vmem:[#allocation2 + $0x1b8] sm:$0xff]   ;;  %v3243_v38 = vld [vmem:[#allocation2 + $0x280] sm:$0xff]   ;;  %v3244_v41 = vld [vmem:[#allocation2 + $0x248] sm:$0xff]  }
  0x2b   :  { %2866 = vmatpush3.bf16.msra.mxu1 %v3187_v23  ;;  %2845 = vmatprep.subr.bf16.mxu0 %v3188_v27  ;;  %v3234_v22 = vld [vmem:[%s3702_s0 + $0x8] ss:$48 sps:$4 sm:$0xff]   ;;  %v3238_v24 = vld [vmem:[%s3702_s0 + $0xc] ss:$48 sps:$4 sm:$0xff]   ;;  %v3249_v48 = vld [vmem:[#allocation2 + $0x2d0] sm:$0xff]  }
  0x2c   :  { %2867 = vmatprep.subr.bf16.mxu1 %v3189_v28  ;;  %v3236_v23 = vld [vmem:[%s3702_s0 + $0x68] ss:$48 sps:$4 sm:$0xff]   ;;  %v3239_v25 = vld [vmem:[%s3702_s0 + $0x6c] ss:$48 sps:$4 sm:$0xff]   ;;  %v136_v26 = vrot.slane %v3234_v22, %v3517_v37  ;;  %v143_v28 = vrot.slane %v3238_v24, %v3517_v37  ;;  %v3250_v49 = vld [vmem:[#allocation2 + $0x210] sm:$0xff]  }
  0x2d   :  { %v150_v27 = vrot.slane %v3236_v23, %v3517_v37  ;;  %v3246_v45 = vld [vmem:[#allocation2 + $0x208] sm:$0xff]   ;;  %v3252_v51 = vld [vmem:[#allocation2 + $0x258] sm:$0xff]   ;;  %v3258_v57 = vld [vmem:[#allocation2 + $0x220] sm:$0xff]  }
  0x2e   :  { %2846 = vmatpush3.bf16.msra.mxu0 %v3190_v29  ;;  %v3240_v29 = vld [vmem:[#allocation2 + $0x240] sm:$0xff]   ;;  %v3247_v46 = vld [vmem:[#allocation2 + $0x288] sm:$0xff]   ;;  %v3253_v52 = vld [vmem:[#allocation2 + $0x2d8] sm:$0xff]  }
  0x2f   :  { %2868 = vmatpush3.bf16.msra.mxu1 %v3191_v30  ;;  %2847 = vmatprep.subr.bf16.mxu0 %v3192_v33  ;;  %v157_v30 = vrot.slane %v3239_v25, %v3517_v37  ;;  %v159_v32 = vcombine.high %v136_v26, %v150_v27  ;;  %v158_v33 = vcombine.low %v136_v26, %v150_v27  ;;  %v3255_v54 = vld [vmem:[#allocation2 + $0x298] sm:$0xff]   ;;  %v3281_v22 = vld [vmem:[#allocation2 + $0x380] sm:$0xff]   ;;  %v3282_v27 = vld [vmem:[#allocation2 + $0x348] sm:$0xff]  }
  0x30   :  { %2869 = vmatprep.subr.bf16.mxu1 %v3193_v34  ;;  %v3242_v34 = vld [vmem:[#allocation2 + $0x200] sm:$0xff]  }
  0x31   :  { %v335_v39 = vpack.c.bf16 %v159_v32, %v159_v32  ;;  %v334_v40 = vpack.c.bf16 %v158_v33, %v158_v33  ;;  %v3287_v32 = vld [vmem:[#allocation2 + $0x3d0] sm:$0xff]  }
  0x32   :  { %2848 = vmatpush3.bf16.msra.mxu0 %v3194_v35  ;;  %v161_v35 = vcombine.high %v143_v28, %v157_v30  ;;  %v3288_v33 = vld [vmem:[#allocation2 + $0x310] sm:$0xff]  }
  0x33   :  { %2870 = vmatpush3.bf16.msra.mxu1 %v3195_v36  ;;  %2877 = vmatprep.subr.bf16.mxu0 %v3202_v44  ;;  %v160_v36 = vcombine.low %v143_v28, %v157_v30  ;;  %v3245_v44 = vld [vmem:[#allocation2 + $0x2c8] sm:$0xff]  }
  0x34   :  { %2899 = vmatprep.subr.bf16.mxu1 %v3203_v47  ;;  %v337_v42 = vpack.c.bf16 %v161_v35, %v161_v35  ;;  %v3248_v47 = vld [vmem:[#allocation2 + $0x250] sm:$0xff]   ;;  %v3283_v28 = vld [vmem:[#allocation2 + $0x3c8] sm:$0xff]   ;;  %v3290_v35 = vld [vmem:[#allocation2 + $0x358] sm:$0xff]  }
  0x35   :  { %1930 = vmatmul.mubr.bf16.vlgmr.msra.gmra.mrb[0].mxu0 %v330_v55  ;;  %v336_v43 = vpack.c.bf16 %v160_v36, %v160_v36  ;;  %v3256_v55 = vld [vmem:[#allocation2 + $0x260] sm:$0xff]   ;;  %v3285_v30 = vld [vmem:[#allocation2 + $0x388] sm:$0xff]   ;;  %v3291_v36 = vld [vmem:[#allocation2 + $0x3d8] sm:$0xff]  }
  0x36   :  { %1970 = vmatmul.mubr.bf16.vlgmr.msra.gmra.mrb[0].mxu1 %v332_v58  ;;  %2878 = vmatpush3.bf16.msra.mxu0 %v3204_v50  ;;  %v3251_v50 = vld [vmem:[#allocation2 + $0x290] sm:$0xff]   ;;  %v3259_v58 = vld [vmem:[#allocation2 + $0x2a0] sm:$0xff]  }
  0x37   :  { %2900 = vmatpush3.bf16.msra.mxu1 %v3205_v53  ;;  %2879 = vmatprep.subr.bf16.mxu0 %v3206_v56  ;;  %v3254_v53 = vld [vmem:[#allocation2 + $0x218] sm:$0xff]   ;;  %v3257_v56 = vld [vmem:[#allocation2 + $0x2e0] sm:$0xff]  }
  0x38   :  { %2901 = vmatprep.subr.bf16.mxu1 %v3207_v59  ;;  %2009 = vmatprep.mubr.bf16.mxu0 %v335_v39  ;;  %v3260_v59 = vld [vmem:[#allocation2 + $0x268] sm:$0xff]   ;;  %v3293_v39 = vld [vmem:[#allocation2 + $0x398] sm:$0xff]  }
  0x39   :  { %2049 = vmatprep.mubr.bf16.mxu1 %v337_v42  ;;  %v3296_v42 = vld [vmem:[#allocation2 + $0x320] sm:$0xff]  }
  0x3a   :  { %2880 = vmatpush3.bf16.msra.mxu0 %v3208_v60  ;;  %v3261_v60 = vld [vmem:[#allocation2 + $0x2e8] sm:$0xff]  }
  0x3b   :  { %2902 = vmatpush3.bf16.msra.mxu1 %v3209_v61  ;;  %2881 = vmatprep.subr.bf16.mxu0 %v3210_v62  ;;  %v3262_v61 = vld [vmem:[#allocation2 + $0x228] sm:$0xff]  }
  0x3c   :  { %2903 = vmatprep.subr.bf16.mxu1 %v3211_v63  ;;  %v3263_v62 = vld [vmem:[#allocation2 + $0x2a8] sm:$0xff]   ;;  %v3264_v63 = vld [vmem:[#allocation2 + $0x270] sm:$0xff]  }
  0x3e   :  { %2882 = vmatpush3.bf16.msra.mxu0 %v3212_v0  ;;  %v3265_v0 = vld [vmem:[#allocation2 + $0x2f0] sm:$0xff]  }
  0x3f   :  { %2904 = vmatpush3.bf16.msra.mxu1 %v3213_v1  ;;  %2883 = vmatprep.subr.bf16.mxu0 %v3214_v2  ;;  %v3266_v1 = vld [vmem:[#allocation2 + $0x230] sm:$0xff]  }
  0x40   :  { %2905 = vmatprep.subr.bf16.mxu1 %v3215_v3  ;;  %v3267_v2 = vld [vmem:[#allocation2 + $0x2b0] sm:$0xff]   ;;  %v3268_v3 = vld [vmem:[#allocation2 + $0x278] sm:$0xff]  }
  0x42   :  { %2884 = vmatpush3.bf16.msra.mxu0 %v3216_v4  ;;  %v3269_v4 = vld [vmem:[#allocation2 + $0x2f8] sm:$0xff]  }
  0x43   :  { %2906 = vmatpush3.bf16.msra.mxu1 %v3217_v5  ;;  %2885 = vmatprep.subr.bf16.mxu0 %v3218_v6  ;;  %v3270_v5 = vld [vmem:[#allocation2 + $0x238] sm:$0xff]  }
  0x44   :  { %2907 = vmatprep.subr.bf16.mxu1 %v3219_v7  ;;  %v3271_v6 = vld [vmem:[#allocation2 + $0x2b8] sm:$0xff]   ;;  %v3272_v7 = vld [vmem:[%s3702_s0 + $0x10] ss:$48 sps:$4 sm:$0xff]  }
  0x46   :  { %2886 = vmatpush3.bf16.msra.mxu0 %v3220_v8  ;;  %v3274_v8 = vld [vmem:[%s3702_s0 + $0x70] ss:$48 sps:$4 sm:$0xff]  }
  0x47   :  { %2908 = vmatpush3.bf16.msra.mxu1 %v3221_v9  ;;  %2887 = vmatprep.subr.bf16.mxu0 %v3222_v10  ;;  %v3276_v9 = vld [vmem:[%s3702_s0 + $0x14] ss:$48 sps:$4 sm:$0xff]  }
  0x48   :  { %2909 = vmatprep.subr.bf16.mxu1 %v3223_v11  ;;  %v3277_v10 = vld [vmem:[%s3702_s0 + $0x74] ss:$48 sps:$4 sm:$0xff]   ;;  %v172_v11 = vrot.slane %v3272_v7, %v3517_v37 }
  0x49   :  { %v3319_v7 = vld [vmem:[#allocation2 + $0x480] sm:$0xff]  }
  0x4a   :  { %2888 = vmatpush3.bf16.msra.mxu0 %v3224_v12  ;;  %v3278_v12 = vld [vmem:[#allocation2 + $0x340] sm:$0xff]  }
  0x4b   :  { %2910 = vmatpush3.bf16.msra.mxu1 %v3225_v13  ;;  %2889 = vmatprep.subr.bf16.mxu0 %v3226_v14  ;;  %v186_v13 = vrot.slane %v3274_v8, %v3517_v37  ;;  %v179_v14 = vrot.slane %v3276_v9, %v3517_v37 }
  0x4c   :  { %2911 = vmatprep.subr.bf16.mxu1 %v3227_v15  ;;  %v193_v15 = vrot.slane %v3277_v10, %v3517_v37  ;;  %v3320_v10 = vld [vmem:[#allocation2 + $0x448] sm:$0xff]  }
  0x4e   :  { %2890 = vmatpush3.bf16.msra.mxu0 %v3228_v16  ;;  %v3279_v16 = vld [vmem:[#allocation2 + $0x3c0] sm:$0xff]  }
  0x4f   :  { %2912 = vmatpush3.bf16.msra.mxu1 %v3229_v17  ;;  %2891 = vmatprep.subr.bf16.mxu0 %v3230_v18  ;;  %v195_v17 = vcombine.high %v172_v11, %v186_v13  ;;  %v197_v18 = vcombine.high %v179_v14, %v193_v15 }
  0x50   :  { %2913 = vmatprep.subr.bf16.mxu1 %v3231_v19  ;;  %v194_v19 = vcombine.low %v172_v11, %v186_v13  ;;  %v3321_v13 = vld [vmem:[#allocation2 + $0x4c8] sm:$0xff]  }
  0x51   :  { %v339_v23 = vpack.c.bf16 %v195_v17, %v195_v17  ;;  %v341_v24 = vpack.c.bf16 %v197_v18, %v197_v18  ;;  %v3325_v17 = vld [vmem:[#allocation2 + $0x4d0] sm:$0xff]  }
  0x52   :  { %2892 = vmatpush3.bf16.msra.mxu0 %v3232_v20  ;;  %v196_v20 = vcombine.low %v179_v14, %v193_v15  ;;  %v338_v25 = vpack.c.bf16 %v194_v19, %v194_v19  ;;  %v3322_v14 = vld [vmem:[#allocation2 + $0x408] sm:$0xff]   ;;  %v3326_v18 = vld [vmem:[#allocation2 + $0x410] sm:$0xff]  }
  0x53   :  { %2914 = vmatpush3.bf16.msra.mxu1 %v3233_v21  ;;  %2921 = vmatprep.subr.bf16.mxu0 %v3240_v29  ;;  %v3280_v21 = vld [vmem:[#allocation2 + $0x300] sm:$0xff]   ;;  %v3284_v29 = vld [vmem:[#allocation2 + $0x308] sm:$0xff]   ;;  %v3327_v19 = vld [vmem:[#allocation2 + $0x490] sm:$0xff]  }
  0x54   :  { %2943 = vmatprep.subr.bf16.mxu1 %v3241_v31  ;;  %v340_v26 = vpack.c.bf16 %v196_v20, %v196_v20  ;;  %v3286_v31 = vld [vmem:[#allocation2 + $0x350] sm:$0xff]   ;;  %v3323_v15 = vld [vmem:[#allocation2 + $0x488] sm:$0xff]   ;;  %v3328_v20 = vld [vmem:[#allocation2 + $0x458] sm:$0xff]  }
  0x55   :  { %2010 = vmatmul.mubr.bf16.vlgmr.msra.gmra.mrb[4].mxu0 %v334_v40  ;;  %v3294_v40 = vld [vmem:[#allocation2 + $0x360] sm:$0xff]  }
  0x56   :  { %2050 = vmatmul.mubr.bf16.vlgmr.msra.gmra.mrb[4].mxu1 %v336_v43  ;;  %2922 = vmatpush3.bf16.msra.mxu0 %v3242_v34  ;;  %v3289_v34 = vld [vmem:[#allocation2 + $0x390] sm:$0xff]   ;;  %v3297_v43 = vld [vmem:[#allocation2 + $0x3a0] sm:$0xff]  }
  0x57   :  { %2944 = vmatpush3.bf16.msra.mxu1 %v3243_v38  ;;  %2923 = vmatprep.subr.bf16.mxu0 %v3244_v41  ;;  %v3292_v38 = vld [vmem:[#allocation2 + $0x318] sm:$0xff]   ;;  %v3295_v41 = vld [vmem:[#allocation2 + $0x3e0] sm:$0xff]  }
  0x58   :  { %2945 = vmatprep.subr.bf16.mxu1 %v3245_v44  ;;  %2089 = vmatprep.mubr.bf16.mxu0 %v339_v23  ;;  %v3298_v44 = vld [vmem:[#allocation2 + $0x368] sm:$0xff]   ;;  %v3331_v23 = vld [vmem:[#allocation2 + $0x498] sm:$0xff]  }
  0x59   :  { %2129 = vmatprep.mubr.bf16.mxu1 %v341_v24  ;;  %v3332_v24 = vld [vmem:[#allocation2 + $0x460] sm:$0xff]  }
  0x5a   :  { %2924 = vmatpush3.bf16.msra.mxu0 %v3246_v45  ;;  %v3299_v45 = vld [vmem:[#allocation2 + $0x3e8] sm:$0xff]  }
  0x5b   :  { %2946 = vmatpush3.bf16.msra.mxu1 %v3247_v46  ;;  %2925 = vmatprep.subr.bf16.mxu0 %v3248_v47  ;;  %v3300_v46 = vld [vmem:[#allocation2 + $0x328] sm:$0xff]  }
  0x5c   :  { %2947 = vmatprep.subr.bf16.mxu1 %v3249_v48  ;;  %v3301_v47 = vld [vmem:[#allocation2 + $0x3a8] sm:$0xff]   ;;  %v3302_v48 = vld [vmem:[#allocation2 + $0x370] sm:$0xff]  }
  0x5e   :  { %2926 = vmatpush3.bf16.msra.mxu0 %v3250_v49  ;;  %v3303_v49 = vld [vmem:[#allocation2 + $0x3f0] sm:$0xff]  }
  0x5f   :  { %2948 = vmatpush3.bf16.msra.mxu1 %v3251_v50  ;;  %2927 = vmatprep.subr.bf16.mxu0 %v3252_v51  ;;  %v3304_v50 = vld [vmem:[#allocation2 + $0x330] sm:$0xff]  }
  0x60   :  { %2949 = vmatprep.subr.bf16.mxu1 %v3253_v52  ;;  %v3305_v51 = vld [vmem:[#allocation2 + $0x3b0] sm:$0xff]   ;;  %v3306_v52 = vld [vmem:[#allocation2 + $0x378] sm:$0xff]  }
  0x62   :  { %2928 = vmatpush3.bf16.msra.mxu0 %v3254_v53  ;;  %v3307_v53 = vld [vmem:[#allocation2 + $0x3f8] sm:$0xff]  }
  0x63   :  { %2950 = vmatpush3.bf16.msra.mxu1 %v3255_v54  ;;  %2929 = vmatprep.subr.bf16.mxu0 %v3256_v55  ;;  %v3308_v54 = vld [vmem:[#allocation2 + $0x338] sm:$0xff]  }
  0x64   :  { %2951 = vmatprep.subr.bf16.mxu1 %v3257_v56  ;;  %v3309_v55 = vld [vmem:[#allocation2 + $0x3b8] sm:$0xff]  }
  0x65   :  { %v3310_v56 = vld [vmem:[%s3702_s0 + $0x18] ss:$48 sps:$4 sm:$0xff]  }
  0x66   :  { %2930 = vmatpush3.bf16.msra.mxu0 %v3258_v57  ;;  %v3312_v57 = vld [vmem:[%s3702_s0 + $0x78] ss:$48 sps:$4 sm:$0xff]  }
  0x67   :  { %2952 = vmatpush3.bf16.msra.mxu1 %v3259_v58  ;;  %2931 = vmatprep.subr.bf16.mxu0 %v3260_v59  ;;  %v3314_v58 = vld [vmem:[%s3702_s0 + $0x1c] ss:$48 sps:$4 sm:$0xff]  }
  0x68   :  { %2953 = vmatprep.subr.bf16.mxu1 %v3261_v60  ;;  %v3315_v59 = vld [vmem:[%s3702_s0 + $0x7c] ss:$48 sps:$4 sm:$0xff]   ;;  %v208_v60 = vrot.slane %v3310_v56, %v3517_v37  ;;  %v3357_v56 = vld [vmem:[#allocation2 + $0x580] sm:$0xff]  }
  0x6a   :  { %2932 = vmatpush3.bf16.msra.mxu0 %v3262_v61  ;;  %v222_v61 = vrot.slane %v3312_v57, %v3517_v37 }
  0x6b   :  { %2954 = vmatpush3.bf16.msra.mxu1 %v3263_v62  ;;  %2933 = vmatprep.subr.bf16.mxu0 %v3264_v63  ;;  %v3316_v62 = vld [vmem:[#allocation2 + $0x440] sm:$0xff]   ;;  %v215_v63 = vrot.slane %v3314_v58, %v3517_v37 }
  0x6c   :  { %2955 = vmatprep.subr.bf16.mxu1 %v3265_v0  ;;  %v229_v0 = vrot.slane %v3315_v59, %v3517_v37  ;;  %v3358_v59 = vld [vmem:[#allocation2 + $0x548] sm:$0xff]  }
  0x6e   :  { %2934 = vmatpush3.bf16.msra.mxu0 %v3266_v1  ;;  %v3317_v1 = vld [vmem:[#allocation2 + $0x4c0] sm:$0xff]  }
  0x6f   :  { %2956 = vmatpush3.bf16.msra.mxu1 %v3267_v2  ;;  %2935 = vmatprep.subr.bf16.mxu0 %v3268_v3  ;;  %v231_v2 = vcombine.high %v208_v60, %v222_v61  ;;  %v230_v3 = vcombine.low %v208_v60, %v222_v61 }
  0x70   :  { %2957 = vmatprep.subr.bf16.mxu1 %v3269_v4  ;;  %v3318_v4 = vld [vmem:[#allocation2 + $0x400] sm:$0xff]  }
  0x71   :  { %v343_v8 = vpack.c.bf16 %v231_v2, %v231_v2  ;;  %v342_v9 = vpack.c.bf16 %v230_v3, %v230_v3  ;;  %v3363_v2 = vld [vmem:[#allocation2 + $0x5d0] sm:$0xff]  }
  0x72   :  { %2936 = vmatpush3.bf16.msra.mxu0 %v3270_v5  ;;  %v233_v5 = vcombine.high %v215_v63, %v229_v0  ;;  %v3364_v3 = vld [vmem:[#allocation2 + $0x510] sm:$0xff]  }
  0x73   :  { %2958 = vmatpush3.bf16.msra.mxu1 %v3271_v6  ;;  %2965 = vmatprep.subr.bf16.mxu0 %v3278_v12  ;;  %v232_v6 = vcombine.low %v215_v63, %v229_v0  ;;  %v3360_v63 = vld [vmem:[#allocation2 + $0x508] sm:$0xff]  }
  0x74   :  { %2987 = vmatprep.subr.bf16.mxu1 %v3279_v16  ;;  %v345_v11 = vpack.c.bf16 %v233_v5, %v233_v5  ;;  %v3324_v16 = vld [vmem:[#allocation2 + $0x450] sm:$0xff]   ;;  %v3361_v0 = vld [vmem:[#allocation2 + $0x588] sm:$0xff]   ;;  %v3366_v5 = vld [vmem:[#allocation2 + $0x558] sm:$0xff]  }
  0x75   :  { %2090 = vmatmul.mubr.bf16.vlgmr.msra.gmra.mrb[8].mxu0 %v338_v25  ;;  %v344_v12 = vpack.c.bf16 %v232_v6, %v232_v6  ;;  %v3333_v25 = vld [vmem:[#allocation2 + $0x4e0] sm:$0xff]   ;;  %v3367_v6 = vld [vmem:[#allocation2 + $0x5d8] sm:$0xff]  }
  0x76   :  { %2130 = vmatmul.mubr.bf16.vlgmr.msra.gmra.mrb[8].mxu1 %v340_v26  ;;  %2966 = vmatpush3.bf16.msra.mxu0 %v3280_v21  ;;  %v3329_v21 = vld [vmem:[#allocation2 + $0x4d8] sm:$0xff]   ;;  %v3334_v26 = vld [vmem:[#allocation2 + $0x420] sm:$0xff]  }
  0x77   :  { %2988 = vmatpush3.bf16.msra.mxu1 %v3281_v22  ;;  %2967 = vmatprep.subr.bf16.mxu0 %v3282_v27  ;;  %v3330_v22 = vld [vmem:[#allocation2 + $0x418] sm:$0xff]   ;;  %v3335_v27 = vld [vmem:[#allocation2 + $0x4a0] sm:$0xff]  }
  0x78   :  { %2989 = vmatprep.subr.bf16.mxu1 %v3283_v28  ;;  %2169 = vmatprep.mubr.bf16.mxu0 %v343_v8  ;;  %v3336_v28 = vld [vmem:[#allocation2 + $0x468] sm:$0xff]   ;;  %v3369_v8 = vld [vmem:[#allocation2 + $0x598] sm:$0xff]  }
  0x79   :  { %2209 = vmatprep.mubr.bf16.mxu1 %v345_v11  ;;  %v3372_v11 = vld [vmem:[#allocation2 + $0x520] sm:$0xff]  }
  0x7a   :  { %2968 = vmatpush3.bf16.msra.mxu0 %v3284_v29  ;;  %v3337_v29 = vld [vmem:[#allocation2 + $0x4e8] sm:$0xff]  }
  0x7b   :  { %2990 = vmatpush3.bf16.msra.mxu1 %v3285_v30  ;;  %2969 = vmatprep.subr.bf16.mxu0 %v3286_v31  ;;  %v3338_v30 = vld [vmem:[#allocation2 + $0x428] sm:$0xff]  }
  0x7c   :  { %2991 = vmatprep.subr.bf16.mxu1 %v3287_v32  ;;  %v3339_v31 = vld [vmem:[#allocation2 + $0x4a8] sm:$0xff]   ;;  %v3340_v32 = vld [vmem:[#allocation2 + $0x470] sm:$0xff]  }
  0x7e   :  { %2970 = vmatpush3.bf16.msra.mxu0 %v3288_v33  ;;  %v3341_v33 = vld [vmem:[#allocation2 + $0x4f0] sm:$0xff]  }
  0x7f   :  { %2992 = vmatpush3.bf16.msra.mxu1 %v3289_v34  ;;  %2971 = vmatprep.subr.bf16.mxu0 %v3290_v35  ;;  %v3342_v34 = vld [vmem:[#allocation2 + $0x430] sm:$0xff]  }
  0x80   :  { %2993 = vmatprep.subr.bf16.mxu1 %v3291_v36  ;;  %v3343_v35 = vld [vmem:[#allocation2 + $0x4b0] sm:$0xff]   ;;  %v3344_v36 = vld [vmem:[#allocation2 + $0x478] sm:$0xff]  }
  0x82   :  { %2972 = vmatpush3.bf16.msra.mxu0 %v3292_v38  ;;  %v3345_v38 = vld [vmem:[#allocation2 + $0x4f8] sm:$0xff]  }
  0x83   :  { %2994 = vmatpush3.bf16.msra.mxu1 %v3293_v39  ;;  %2973 = vmatprep.subr.bf16.mxu0 %v3294_v40  ;;  %v3346_v39 = vld [vmem:[#allocation2 + $0x438] sm:$0xff]  }
  0x84   :  { %2995 = vmatprep.subr.bf16.mxu1 %v3295_v41  ;;  %v3347_v40 = vld [vmem:[#allocation2 + $0x4b8] sm:$0xff]   ;;  %v3348_v41 = vld [vmem:[%s3702_s0 + $0x20] ss:$48 sps:$4 sm:$0xff]  }
  0x86   :  { %2974 = vmatpush3.bf16.msra.mxu0 %v3296_v42  ;;  %v3350_v42 = vld [vmem:[%s3702_s0 + $0x80] ss:$48 sps:$4 sm:$0xff]  }
  0x87   :  { %2996 = vmatpush3.bf16.msra.mxu1 %v3297_v43  ;;  %2975 = vmatprep.subr.bf16.mxu0 %v3298_v44  ;;  %v3352_v43 = vld [vmem:[%s3702_s0 + $0x24] ss:$48 sps:$4 sm:$0xff]  }
  0x88   :  { %2997 = vmatprep.subr.bf16.mxu1 %v3299_v45  ;;  %v3353_v44 = vld [vmem:[%s3702_s0 + $0x84] ss:$48 sps:$4 sm:$0xff]   ;;  %v244_v45 = vrot.slane %v3348_v41, %v3517_v37 }
  0x8a   :  { %2976 = vmatpush3.bf16.msra.mxu0 %v3300_v46  ;;  %v258_v46 = vrot.slane %v3350_v42, %v3517_v37 }
  0x8b   :  { %2998 = vmatpush3.bf16.msra.mxu1 %v3301_v47  ;;  %2977 = vmatprep.subr.bf16.mxu0 %v3302_v48  ;;  %v251_v47 = vrot.slane %v3352_v43, %v3517_v37  ;;  %v3354_v48 = vld [vmem:[#allocation2 + $0x540] sm:$0xff]  }
  0x8c   :  { %2999 = vmatprep.subr.bf16.mxu1 %v3303_v49  ;;  %v265_v49 = vrot.slane %v3353_v44, %v3517_v37 }
  0x8e   :  { %2978 = vmatpush3.bf16.msra.mxu0 %v3304_v50  ;;  %v3355_v50 = vld [vmem:[#allocation2 + $0x5c0] sm:$0xff]  }
  0x8f   :  { %3000 = vmatpush3.bf16.msra.mxu1 %v3305_v51  ;;  %2979 = vmatprep.subr.bf16.mxu0 %v3306_v52  ;;  %v267_v51 = vcombine.high %v244_v45, %v258_v46  ;;  %v266_v52 = vcombine.low %v244_v45, %v258_v46 }
  0x90   :  { %3001 = vmatprep.subr.bf16.mxu1 %v3307_v53  ;;  %v3356_v53 = vld [vmem:[#allocation2 + $0x500] sm:$0xff]  }
  0x91   :  { %v347_v57 = vpack.c.bf16 %v267_v51, %v267_v51  ;;  %v346_v58 = vpack.c.bf16 %v266_v52, %v266_v52 }
  0x92   :  { %2980 = vmatpush3.bf16.msra.mxu0 %v3308_v54  ;;  %v269_v54 = vcombine.high %v251_v47, %v265_v49 }
  0x93   :  { %3002 = vmatpush3.bf16.msra.mxu1 %v3309_v55  ;;  %3009 = vmatprep.subr.bf16.mxu0 %v3316_v62  ;;  %v268_v55 = vcombine.low %v251_v47, %v265_v49  ;;  %v3359_v62 = vld [vmem:[#allocation2 + $0x5c8] sm:$0xff]  }
  0x94   :  { %3031 = vmatprep.subr.bf16.mxu1 %v3317_v1  ;;  %v349_v60 = vpack.c.bf16 %v269_v54, %v269_v54  ;;  %v3362_v1 = vld [vmem:[#allocation2 + $0x550] sm:$0xff]  }
  0x95   :  { %2170 = vmatmul.mubr.bf16.vlgmr.msra.gmra.mrb[12].mxu0 %v342_v9  ;;  %v348_v61 = vpack.c.bf16 %v268_v55, %v268_v55  ;;  %v3370_v9 = vld [vmem:[#allocation2 + $0x560] sm:$0xff]   ;;  %v3392_v54 = vld [vmem:[%s3705_s3] sm:$0xff]   ;;  %v3460_v55 = vmov 0.0  }
  0x96   :  { %2210 = vmatmul.mubr.bf16.vlgmr.msra.gmra.mrb[12].mxu1 %v344_v12  ;;  %3010 = vmatpush3.bf16.msra.mxu0 %v3318_v4  ;;  %v3365_v4 = vld [vmem:[#allocation2 + $0x590] sm:$0xff]   ;;  %v3373_v12 = vld [vmem:[#allocation2 + $0x5a0] sm:$0xff]  }
  0x97   :  { %3032 = vmatpush3.bf16.msra.mxu1 %v3319_v7  ;;  %3011 = vmatprep.subr.bf16.mxu0 %v3320_v10  ;;  %v3368_v7 = vld [vmem:[#allocation2 + $0x518] sm:$0xff]   ;;  %v3371_v10 = vld [vmem:[#allocation2 + $0x5e0] sm:$0xff]  }
  0x98   :  { %3033 = vmatprep.subr.bf16.mxu1 %v3321_v13  ;;  %2249 = vmatprep.mubr.bf16.mxu0 %v347_v57  ;;  %v3374_v13 = vld [vmem:[#allocation2 + $0x568] sm:$0xff]   ;;  %v3394_v57 = vld [vmem:[%s3705_s3 + $0x10] sm:$0xff]  }
  0x99   :  { %2289 = vmatprep.mubr.bf16.mxu1 %v349_v60 }
  0x9a   :  { %3012 = vmatpush3.bf16.msra.mxu0 %v3322_v14  ;;  %v3375_v14 = vld [vmem:[#allocation2 + $0x5e8] sm:$0xff]  }
  0x9b   :  { %3034 = vmatpush3.bf16.msra.mxu1 %v3323_v15  ;;  %3013 = vmatprep.subr.bf16.mxu0 %v3324_v16  ;;  %v3376_v15 = vld [vmem:[#allocation2 + $0x528] sm:$0xff]  }
  0x9c   :  { %3035 = vmatprep.subr.bf16.mxu1 %v3325_v17  ;;  %v3377_v16 = vld [vmem:[#allocation2 + $0x5a8] sm:$0xff]   ;;  %v3378_v17 = vld [vmem:[#allocation2 + $0x570] sm:$0xff]  }
  0x9e   :  { %3014 = vmatpush3.bf16.msra.mxu0 %v3326_v18  ;;  %v3379_v18 = vld [vmem:[#allocation2 + $0x5f0] sm:$0xff]  }
  0x9f   :  { %3036 = vmatpush3.bf16.msra.mxu1 %v3327_v19  ;;  %3015 = vmatprep.subr.bf16.mxu0 %v3328_v20  ;;  %v3380_v19 = vld [vmem:[#allocation2 + $0x530] sm:$0xff]  }
  0xa0   :  { %3037 = vmatprep.subr.bf16.mxu1 %v3329_v21  ;;  %v3381_v20 = vld [vmem:[#allocation2 + $0x5b0] sm:$0xff]   ;;  %v3382_v21 = vld [vmem:[#allocation2 + $0x578] sm:$0xff]  }
  0xa2   :  { %3016 = vmatpush3.bf16.msra.mxu0 %v3330_v22  ;;  %v3383_v22 = vld [vmem:[#allocation2 + $0x5f8] sm:$0xff]  }
  0xa3   :  { %3038 = vmatpush3.bf16.msra.mxu1 %v3331_v23  ;;  %3017 = vmatprep.subr.bf16.mxu0 %v3332_v24  ;;  %v3384_v23 = vld [vmem:[#allocation2 + $0x538] sm:$0xff]  }
  0xa4   :  { %3039 = vmatprep.subr.bf16.mxu1 %v3333_v25  ;;  %v3385_v24 = vld [vmem:[#allocation2 + $0x5b8] sm:$0xff]  }
  0xa5   :  { %v3386_v25 = vld [vmem:[%s3702_s0 + $0x28] ss:$48 sps:$4 sm:$0xff]  }
  0xa6   :  { %3018 = vmatpush3.bf16.msra.mxu0 %v3334_v26  ;;  %v3388_v26 = vld [vmem:[%s3702_s0 + $0x88] ss:$48 sps:$4 sm:$0xff]  }
  0xa7   :  { %3040 = vmatpush3.bf16.msra.mxu1 %v3335_v27  ;;  %3019 = vmatprep.subr.bf16.mxu0 %v3336_v28  ;;  %v3390_v27 = vld [vmem:[%s3702_s0 + $0x2c] ss:$48 sps:$4 sm:$0xff]  }
  0xa8   :  { %3041 = vmatprep.subr.bf16.mxu1 %v3337_v29  ;;  %v3391_v28 = vld [vmem:[%s3702_s0 + $0x8c] ss:$48 sps:$4 sm:$0xff]   ;;  %v280_v29 = vrot.slane %v3386_v25, %v3517_v37 }
  0xaa   :  { %3020 = vmatpush3.bf16.msra.mxu0 %v3338_v30  ;;  %v294_v30 = vrot.slane %v3388_v26, %v3517_v37 }
  0xab   :  { %3042 = vmatpush3.bf16.msra.mxu1 %v3339_v31  ;;  %3021 = vmatprep.subr.bf16.mxu0 %v3340_v32  ;;  %v287_v31 = vrot.slane %v3390_v27, %v3517_v37  ;;  %v301_v32 = vrot.slane %v3391_v28, %v3517_v37  ;;  %v2622_v37 = vld [vmem:[%s3704_s2] ss:$0 sm:$0xff]  ;;  %v3405_v28 = vld [vmem:[%s3707_s5 + $0x28] sm:$0xff]  }
  0xac   :  { %3043 = vmatprep.subr.bf16.mxu1 %v3341_v33  ;;  %v303_v33 = vcombine.high %v280_v29, %v294_v30 }
  0xae   :  { %3022 = vmatpush3.bf16.msra.mxu0 %v3342_v34  ;;  %v305_v34 = vcombine.high %v287_v31, %v301_v32 }
  0xaf   :  { %3044 = vmatpush3.bf16.msra.mxu1 %v3343_v35  ;;  %3023 = vmatprep.subr.bf16.mxu0 %v3344_v36  ;;  %v302_v35 = vcombine.low %v280_v29, %v294_v30  ;;  %v304_v36 = vcombine.low %v287_v31, %v301_v32 }
  0xb0   :  { %3045 = vmatprep.subr.bf16.mxu1 %v3345_v38  ;;  %v351_v38 = vpack.c.bf16 %v303_v33, %v303_v33 }
  0xb1   :  { %v352_v41 = vpack.c.bf16 %v304_v36, %v304_v36 }
  0xb2   :  { %3024 = vmatpush3.bf16.msra.mxu0 %v3346_v39  ;;  %v353_v39 = vpack.c.bf16 %v305_v34, %v305_v34 }
  0xb3   :  { %3046 = vmatpush3.bf16.msra.mxu1 %v3347_v40  ;;  %3053 = vmatprep.subr.bf16.mxu0 %v3354_v48  ;;  %v350_v40 = vpack.c.bf16 %v302_v35, %v302_v35 }
  0xb4   :  { %3075 = vmatprep.subr.bf16.mxu1 %v3355_v50 }
  0xb5   :  { %2250 = vmatmul.mubr.bf16.vlgmr.msra.gmra.mrb[16].mxu0 %v346_v58  ;;  %v3395_v58 = vld [vmem:[%s3705_s3 + $0x18] sm:$0xff]  }
  0xb6   :  { %2290 = vmatmul.mubr.bf16.vlgmr.msra.gmra.mrb[16].mxu1 %v348_v61  ;;  %3054 = vmatpush3.bf16.msra.mxu0 %v3356_v53 }
  0xb7   :  { %3076 = vmatpush3.bf16.msra.mxu1 %v3357_v56  ;;  %3055 = vmatprep.subr.bf16.mxu0 %v3358_v59  ;;  %v3393_v56 = vld [vmem:[%s3705_s3 + $0x8] sm:$0xff]   ;;  %v3396_v59 = vld [vmem:[%s3705_s3 + $0x20] sm:$0xff]  }
  0xb8   :  { %3077 = vmatprep.subr.bf16.mxu1 %v3359_v62  ;;  %2329 = vmatprep.mubr.bf16.mxu0 %v351_v38 }
  0xb9   :  { %2369 = vmatprep.mubr.bf16.mxu1 %v353_v39 }
  0xba   :  { %3056 = vmatpush3.bf16.msra.mxu0 %v3360_v63 }
  0xbb   :  { %3078 = vmatpush3.bf16.msra.mxu1 %v3361_v0  ;;  %3057 = vmatprep.subr.bf16.mxu0 %v3362_v1 }
  0xbc   :  { %3079 = vmatprep.subr.bf16.mxu1 %v3363_v2 }
  0xbe   :  { %3058 = vmatpush3.bf16.msra.mxu0 %v3364_v3 }
  0xbf   :  { %3080 = vmatpush3.bf16.msra.mxu1 %v3365_v4  ;;  %3059 = vmatprep.subr.bf16.mxu0 %v3366_v5 }
  0xc0   :  { %3081 = vmatprep.subr.bf16.mxu1 %v3367_v6 }
  0xc2   :  { %3060 = vmatpush3.bf16.msra.mxu0 %v3368_v7 }
  0xc3   :  { %3082 = vmatpush3.bf16.msra.mxu1 %v3369_v8  ;;  %3061 = vmatprep.subr.bf16.mxu0 %v3370_v9  ;;  %v3397_v8 = vld [vmem:[%s3705_s3 + $0x28] sm:$0xff]   ;;  %v3398_v9 = vld [vmem:[%s3705_s3 + $0x30] sm:$0xff]  }
  0xc4   :  { %3083 = vmatprep.subr.bf16.mxu1 %v3371_v10  ;;  %v3399_v10 = vld [vmem:[%s3705_s3 + $0x38] sm:$0xff]  }
  0xc6   :  { %3062 = vmatpush3.bf16.msra.mxu0 %v3372_v11  ;;  %v3400_v11 = vld [vmem:[%s3707_s5] sm:$0xff]  }
  0xc7   :  { %3084 = vmatpush3.bf16.msra.mxu1 %v3373_v12  ;;  %3063 = vmatprep.subr.bf16.mxu0 %v3374_v13  ;;  %v3401_v12 = vld [vmem:[%s3707_s5 + $0x8] sm:$0xff]   ;;  %v3402_v13 = vld [vmem:[%s3707_s5 + $0x10] sm:$0xff]  }
  0xc8   :  { %3085 = vmatprep.subr.bf16.mxu1 %v3375_v14  ;;  %v3403_v14 = vld [vmem:[%s3707_s5 + $0x18] sm:$0xff]  }
  0xca   :  { %3064 = vmatpush3.bf16.msra.mxu0 %v3376_v15 }
  0xcb   :  { %3086 = vmatpush3.bf16.msra.mxu1 %v3377_v16  ;;  %3065 = vmatprep.subr.bf16.mxu0 %v3378_v17 }
  0xcc   :  { %3087 = vmatprep.subr.bf16.mxu1 %v3379_v18 }
  0xce   :  { %3066 = vmatpush3.bf16.msra.mxu0 %v3380_v19 }
  0xcf   :  { %3088 = vmatpush3.bf16.msra.mxu1 %v3381_v20  ;;  %3067 = vmatprep.subr.bf16.mxu0 %v3382_v21 }
  0xd0   :  { %3089 = vmatprep.subr.bf16.mxu1 %v3383_v22 }
  0xd2   :  { %3068 = vmatpush3.bf16.msra.mxu0 %v3384_v23  ;;  %v3404_v23 = vld [vmem:[%s3707_s5 + $0x20] sm:$0xff]  }
  0xd3   :  { %3090 = vmatpush3.bf16.msra.mxu1 %v3385_v24  ;;  %3115 = vmatprep.subr.bf16.mxu0 %v3460_v55 }
  0xd4   :  { %3135 = vmatprep.subr.bf16.mxu1 %v3460_v55 }
  0xd5   :  { %2330 = vmatmul.mubr.bf16.vlgmr.msra.gmra.mrb[20].mxu0 %v350_v40 }
  0xd6   :  { %2370 = vmatmul.mubr.bf16.vlgmr.msra.gmra.mrb[20].mxu1 %v352_v41  ;;  %3116 = vmatpush3.bf16.msra.mxu0 %v3392_v54 }
  0xd7   :  { %3117 = vmatprep.subr.bf16.mxu0 %v3460_v55  ;;  %3131 = vmatprep.mubr.msk.bf16.mxu0 %vm3461_vm0, %v3460_v55 }
  0xd8   :  { %3151 = vmatprep.mubr.msk.bf16.mxu1 %vm3461_vm0, %v3460_v55  ;;  %3136 = vmatpush3.bf16.msra.mxu1 %v3400_v11 }
  0xd9   :  { %3137 = vmatprep.subr.bf16.mxu1 %v3460_v55 }
  0xda   :  { %3118 = vmatpush3.bf16.msra.mxu0 %v3393_v56 }
  0xdb   :  { %3119 = vmatprep.subr.bf16.mxu0 %v3460_v55 }
  0xdc   :  { %3138 = vmatpush3.bf16.msra.mxu1 %v3401_v12 }
  0xdd   :  { %3139 = vmatprep.subr.bf16.mxu1 %v3460_v55 }
  0xde   :  { %3120 = vmatpush3.bf16.msra.mxu0 %v3394_v57 }
  0xdf   :  { %3121 = vmatprep.subr.bf16.mxu0 %v3460_v55 }
  0xe0   :  { %3140 = vmatpush3.bf16.msra.mxu1 %v3402_v13 }
  0xe1   :  { %3141 = vmatprep.subr.bf16.mxu1 %v3460_v55 }
  0xe2   :  { %3122 = vmatpush3.bf16.msra.mxu0 %v3395_v58 }
  0xe3   :  { %3123 = vmatprep.subr.bf16.mxu0 %v3460_v55 }
  0xe4   :  { %3142 = vmatpush3.bf16.msra.mxu1 %v3403_v14 }
  0xe5   :  { %3143 = vmatprep.subr.bf16.mxu1 %v3460_v55 }
  0xe6   :  { %3124 = vmatpush3.bf16.msra.mxu0 %v3396_v59 }
  0xe7   :  { %3125 = vmatprep.subr.bf16.mxu0 %v3460_v55 }
  0xe8   :  { %3144 = vmatpush3.bf16.msra.mxu1 %v3404_v23 }
  0xe9   :  { %3145 = vmatprep.subr.bf16.mxu1 %v3460_v55 }
  0xea   :  { %3126 = vmatpush3.bf16.msra.mxu0 %v3397_v8 }
  0xeb   :  { %3127 = vmatprep.subr.bf16.mxu0 %v3460_v55 }
  0xec   :  { %3146 = vmatpush3.bf16.msra.mxu1 %v3405_v28 }
  0xed   :  { %3147 = vmatprep.subr.bf16.mxu1 %v3460_v55 }
  0xee   :  { %3128 = vmatpush3.bf16.msra.mxu0 %v3398_v9 }
  0xef   :  { %3129 = vmatprep.subr.bf16.mxu0 %v3460_v55 }
  0xf2   :  { %3130 = vmatpush3.bf16.msra.mxu0 %v3399_v10 }
 0x108   :  { %v2849_v42 = vpop.f32.mrb[0].mxu0 }
 0x109   :  { %v2871_v43 = vpop.f32.mrb[0].mxu1  ;;  %v2850_v44 = vpop.f32.mrb[1].mxu0 }
 0x10a   :  { %v2851_v45 = vadd.f32 %v2850_v44, %v2849_v42  ;;  %v2872_v46 = vpop.f32.mrb[1].mxu1  ;;  %v2852_v47 = vpop.f32.mrb[2].mxu0 }
 0x10b   :  { %v2873_v48 = vadd.f32 %v2872_v46, %v2871_v43  ;;  %v2874_v49 = vpop.f32.mrb[2].mxu1  ;;  %v2853_v50 = vpop.f32.mrb[3].mxu0 }
 0x10c   :  { %v1932_v51 = vadd.f32 %v2851_v45, %v2622_v37  ;;  %v2875_v52 = vpop.f32.mrb[3].mxu1 }
 0x10e   :  { %v1972_v53 = vadd.f32 %v2873_v48, %v1932_v51 }
 0x128   :  { %v2893_v60 = vpop.f32.mrb[4].mxu0 }
 0x129   :  { %v2915_v61 = vpop.f32.mrb[4].mxu1  ;;  %v2894_v62 = vpop.f32.mrb[5].mxu0 }
 0x12a   :  { %v2895_v63 = vadd.f32 %v2894_v62, %v2893_v60  ;;  %v2916_v0 = vpop.f32.mrb[5].mxu1  ;;  %v2896_v1 = vpop.f32.mrb[6].mxu0 }
 0x12b   :  { %v2917_v2 = vadd.f32 %v2916_v0, %v2915_v61  ;;  %v2918_v3 = vpop.f32.mrb[6].mxu1  ;;  %v2897_v4 = vpop.f32.mrb[7].mxu0 }
 0x12c   :  { %v2012_v5 = vadd.f32 %v2895_v63, %v1972_v53  ;;  %v2919_v6 = vpop.f32.mrb[7].mxu1  ;;  %v3406_v4 = vld [vmem:[%s3707_s5 + $0x30] sm:$0xff]  }
 0x12d   :  { %3148 = vmatpush3.bf16.msra.mxu1 %v3406_v4  ;;  %v2815_v6 = vld [vmem:[%s3706_s4] ss:$0 sm:$0xff] }
 0x12e   :  { %v2052_v7 = vadd.f32 %v2917_v2, %v2012_v5  ;;  %3149 = vmatprep.subr.bf16.mxu1 %v3460_v55  ;;  %v3407_v5 = vld [vmem:[%s3707_s5 + $0x38] sm:$0xff]   ;;  %v2824_v55 = vld [vmem:[%s3708_s6] ss:$0 sm:$0xff] }
 0x131   :  { %3150 = vmatpush3.bf16.msra.mxu1 %v3407_v5 }
 0x148   :  { %v2937_v15 = vpop.f32.mrb[8].mxu0 }
 0x149   :  { %v2959_v16 = vpop.f32.mrb[8].mxu1  ;;  %v2938_v17 = vpop.f32.mrb[9].mxu0 }
 0x14a   :  { %v2960_v18 = vpop.f32.mrb[9].mxu1  ;;  %v2939_v19 = vadd.f32 %v2938_v17, %v2937_v15  ;;  %v2940_v21 = vpop.f32.mrb[10].mxu0 }
 0x14b   :  { %v2961_v20 = vadd.f32 %v2960_v18, %v2959_v16  ;;  %v2962_v22 = vpop.f32.mrb[10].mxu1  ;;  %v2941_v24 = vpop.f32.mrb[11].mxu0 }
 0x14c   :  { %v2963_v25 = vpop.f32.mrb[11].mxu1  ;;  %v2092_v26 = vadd.f32 %v2939_v19, %v2052_v7 }
 0x14e   :  { %v2132_v27 = vadd.f32 %v2961_v20, %v2092_v26 }
 0x168   :  { %v2981_v29 = vpop.f32.mrb[12].mxu0 }
 0x169   :  { %v3003_v30 = vpop.f32.mrb[12].mxu1  ;;  %v2982_v31 = vpop.f32.mrb[13].mxu0 }
 0x16a   :  { %v2983_v32 = vadd.f32 %v2982_v31, %v2981_v29  ;;  %v3004_v33 = vpop.f32.mrb[13].mxu1  ;;  %v2984_v34 = vpop.f32.mrb[14].mxu0 }
 0x16b   :  { %v3005_v35 = vadd.f32 %v3004_v33, %v3003_v30  ;;  %v3006_v36 = vpop.f32.mrb[14].mxu1  ;;  %v2985_v38 = vpop.f32.mrb[15].mxu0 }
 0x16c   :  { %v2172_v39 = vadd.f32 %v2983_v32, %v2132_v27  ;;  %v3007_v40 = vpop.f32.mrb[15].mxu1 }
 0x16e   :  { %v2212_v41 = vadd.f32 %v3005_v35, %v2172_v39 }
 0x188   :  { %v3025_v42 = vpop.f32.mrb[16].mxu0 }
 0x189   :  { %v3047_v43 = vpop.f32.mrb[16].mxu1  ;;  %v3026_v37 = vpop.f32.mrb[17].mxu0 }
 0x18a   :  { %v3027_v44 = vadd.f32 %v3026_v37, %v3025_v42  ;;  %v3048_v45 = vpop.f32.mrb[17].mxu1  ;;  %v3028_v46 = vpop.f32.mrb[18].mxu0 }
 0x18b   :  { %v3049_v47 = vadd.f32 %v3048_v45, %v3047_v43  ;;  %v3050_v48 = vpop.f32.mrb[18].mxu1  ;;  %v3029_v49 = vpop.f32.mrb[19].mxu0 }
 0x18c   :  { %v2252_v50 = vadd.f32 %v3027_v44, %v2212_v41  ;;  %v3051_v51 = vpop.f32.mrb[19].mxu1 }
 0x18e   :  { %v2292_v52 = vadd.f32 %v3049_v47, %v2252_v50 }
 0x1a8   :  { %v3069_v53 = vpop.f32.mrb[20].mxu0 }
 0x1a9   :  { %v3091_v54 = vpop.f32.mrb[20].mxu1  ;;  %v3070_v56 = vpop.f32.mrb[21].mxu0 }
 0x1aa   :  { %v3092_v57 = vpop.f32.mrb[21].mxu1  ;;  %v3071_v58 = vadd.f32 %v3070_v56, %v3069_v53  ;;  %v3072_v60 = vpop.f32.mrb[22].mxu0 }
 0x1ab   :  { %v3093_v59 = vadd.f32 %v3092_v57, %v3091_v54  ;;  %v3094_v61 = vpop.f32.mrb[22].mxu1  ;;  %v3073_v62 = vpop.f32.mrb[23].mxu0 }
 0x1ac   :  { %v3095_v63 = vpop.f32.mrb[23].mxu1  ;;  %v2332_v0 = vadd.f32 %v3071_v58, %v2292_v52 }
 0x1ae   :  { %v2372_v1 = vadd.f32 %v3093_v59, %v2332_v0 }
 0x1b0   :  { %v2377_v2 = vmax.f32 %v2372_v1, 0.0 }
 0x1b2   :  { %v2378_v3 = vpack.c.bf16 %v2377_v2, %v2377_v2 }
 0x1b4   :  { %3132 = vmatmul.mubr.bf16.vlgmr.msra.gmra.mrb[24].mxu0 %v2378_v3 }
 0x287   :  { %v2484_v7 = vpop.f32.mrb[24].mxu0 }
 0x288   :  { %v2485_v8 = vadd.f32 %v2815_v6, %v2484_v7  ;;  %v3133_v9 = vpop.f32.mrb[25].mxu0 }
 0x289   :  { %v2487_v10 = vpop.f32.mrb[26].mxu0 }
 0x28a   :  { %v2490_v11 = vmax.f32 %v2485_v8, 0.0  ;;  %v3134_v12 = vpop.f32.mrb[27].mxu0 }
 0x28c   :  { %v2491_v13 = vpack.c.bf16 %v2490_v11, %v2490_v11 }
 0x28e   :  { %3152 = vmatmul.mubr.bf16.vlgmr.msra.gmra.mrb[24].mxu1 %v2491_v13 }
 0x361   :  { %v2597_v14 = vpop.f32.mrb[24].mxu1 }
 0x362   :  { %v2598_v15 = vadd.f32 %v2824_v55, %v2597_v14  ;;  %v3153_v16 = vpop.f32.mrb[25].mxu1 }
 0x363   :  { %v2600_v17 = vpop.f32.mrb[26].mxu1 }
 0x364   :  { %v2603_v18 = vmax.f32 %v2598_v15, 0.0  ;;  %v3154_v19 = vpop.f32.mrb[27].mxu1 }
 0x366   :  { %2604 = vst [vmem:[#allocation5] sm:$0xff] %v2603_v18 }
 0x367   :  { %2609 = vsyncadd [#allocation4], 96  ;;  %s3462_s4 = smov [#allocation5]  }
 0x368   :  { %s2610_s5 = sshll.u32 %s3462_s4, 4  ;;  %s2611_s5 = int_to_ptr.vmem [resolvable:$true] %s2610_s5 }
 0x369   :  { %s3430_s23 = scalar_lea.vmem %s2611_s5, 32  ;;  %s3434_s24 = scalar_lea.vmem %s2611_s5, 128 }
 0x36a   :  { %p3431_p8 = scmp.ne.s32.totalorder %s2611_s5, %s3430_s23  ;;  %p3435_p9 = scmp.lt.s32.totalorder %s2611_s5, %s2611_s5 }
 0x36b   :  { %p3436_p10 = scmp.lt.s32.totalorder %s3434_s24, %s3430_s23 }
 0x36d   :  { %p3437_p11 = por %p3436_p10, %p3435_p9 }
 0x36f   :  { %p3438_p12 = pnand %p3437_p11, %p3431_p8 }
 0x371   :  { %3441 = shalt.err (!%p3438_p12)
}
 0x372   :  { %s3442_s26 = scalar_lea.hbm %s3709_s7, 32 }
 0x373   :  { %p3443_p13 = scmp.ne.s32.totalorder %s3709_s7, %s3442_s26  ;;  %p3446_p0 = scmp.lt.u32.totalorder %s3442_s26, %s3709_s7 }
 0x375   :  { %p3448_p1 = pnand %p3446_p0, %p3443_p13 }
 0x377   :  { %3451 = shalt.err (!%p3448_p1)
}
 0x378   :  { %s3463_s8 = smov 32   ;;  %s3464_s9 = smov 2  }
 0x379   :  { %2616 = dma.vmem_to_hbm [thread:$0]  %s2611_s5, 32, %s3709_s7, [#allocation4], %s3463_s8, %s3463_s8, %s3464_s9  }
 0x37a   :  { %3454 = dma.done.wait [#allocation4], 128  }
 0x37b   :  { %3455 = vsyncadd [#allocation4], 4294967168 }
 0x37c   :  { %2620 = vsyncpa [#allocation3], 1 }
 0x37d   :  { %2621 = vsyncpa [#allocation4], 1 }

</bundles_post_ra>
